<compile_context>
chip_gen: v5e
topology: v5e:2x2
jax: 0.10.0
libtpu: 0.0.40
codegen_flags: <defaults>
</compile_context>

<pallas_src>
import math
import functools

import jax
import jax.numpy as jnp
import numpy as np
from jax import lax
from jax.experimental import pallas as pl
from jax.experimental.pallas import tpu as pltpu


# ----------------------------- small helpers -----------------------------

def _layer_norm(x, gamma, beta, eps=1e-12):
    # matches modeling.BertLayerNorm: mean/var over last axis, eps=1e-12 (f32)
    u = jnp.mean(x, axis=-1, keepdims=True)
    s = jnp.mean((x - u) * (x - u), axis=-1, keepdims=True)
    return (x - u) * lax.rsqrt(s + eps) * gamma + beta


def _gelu_exact(x):
    # original BERT gelu: x * 0.5 * (1 + erf(x / sqrt(2)))  (exact erf, f32)
    return x * 0.5 * (1.0 + lax.erf(x * (1.0 / math.sqrt(2.0))))


def _physical_vmem_bytes():
    try:
        return int(pltpu.get_tpu_info().vmem_capacity_bytes)
    except Exception:
        return 64 << 20          # conservative default: assume v7x-sized VMEM


def _vmem_cap_bytes():
    # never request the full physical VMEM (leave headroom for Mosaic scratch)
    return max(32 << 20, (_physical_vmem_bytes() * 3) // 4)


@functools.lru_cache(maxsize=None)
def _single_buffer_supported():
    """Probe (once) whether pipeline_mode=pl.Buffered(1) lowers on this jax/TPU."""
    try:
        def k(x_ref, o_ref):
            o_ref[...] = x_ref[...] * 2.0
        spec = pl.BlockSpec((8, 128), lambda i: (0, 0),
                            pipeline_mode=pl.Buffered(1))
        out = pl.pallas_call(
            k,
            out_shape=jax.ShapeDtypeStruct((8, 128), jnp.float32),
            grid=(2,),
            in_specs=[spec],
            out_specs=pl.BlockSpec((8, 128), lambda i: (0, 0)),
        )(jnp.ones((8, 128), jnp.float32))
        jax.block_until_ready(out)
        return True
    except Exception:
        return False


def _const_spec(shape):
    """BlockSpec for a grid-invariant (weight) operand; single-buffered if possible."""
    nd = len(shape)
    idx = lambda b, t, _nd=nd: (0,) * _nd
    if _single_buffer_supported():
        return pl.BlockSpec(shape, idx, pipeline_mode=pl.Buffered(1))
    return pl.BlockSpec(shape, idx)


def _pick_seq_tile(S):
    # 256-row tiles on 128 MiB-VMEM chips (v5e/v6e), 128 on v7x (64 MiB).
    # Falls back to smaller divisors instead of the full sequence for odd S.
    prefer = 256 if _physical_vmem_bytes() >= (96 << 20) else 128
    for t in (prefer, 128, 64, 32, 16, 8):
        if t <= S and S % t == 0:
            return t
    return S


def _vmem_limit_bytes(S, TQ, H, I, num_heads, return_probs):
    """Explicit scoped-VMEM budget (bytes) for one attention-kernel step."""
    bf, f32 = 2, 4
    weights = (H * H + H * H + H * I + I * H) * bf                 # wq, wo, wi, wo2
    params_1d = (7 * H + I) * f32                                  # biases + LN params
    blocks_in = TQ * H * bf + S * 2 * H * bf + S * f32             # x tile, kv slab, mask
    blocks_out = TQ * H * bf + (num_heads * TQ * S * bf if return_probs else 0)
    live = (4 * TQ * H + 2 * TQ * S + TQ * I) * f32                # f32 temporaries + ctx scratch
    est = 2 * (weights + params_1d + blocks_in + blocks_out) + live + (8 << 20)
    return int(min(max(est, 32 << 20), _vmem_cap_bytes()))


# ----------------------------- KV projection kernel (once per layer) ----------

def kv_proj_kernel(x_ref, wkv_ref, bkv_ref, kv_ref):
    x = x_ref[0]                                                   # (TS, H) bf16
    kv = jnp.dot(x, wkv_ref[...], preferred_element_type=jnp.float32) + bkv_ref[...]
    kv_ref[0] = kv.astype(kv_ref.dtype)


def kv_projection(hidden, wkv, bkv, *, s_tile=None):
    """hidden (B,S,H) bf16 -> concatenated K|V (B,S,2H) bf16, computed once."""
    B, S, H = hidden.shape
    H2 = wkv.shape[1]
    TS = s_tile or _pick_seq_tile(S)
    assert S % TS == 0
    return pl.pallas_call(
        kv_proj_kernel,
        out_shape=jax.ShapeDtypeStruct((B, S, H2), jnp.bfloat16),
        grid_spec=pltpu.PrefetchScalarGridSpec(
            num_scalar_prefetch=0,
            grid=(B, S // TS),
            in_specs=[pl.BlockSpec((1, TS, H), lambda b, t: (b, t, 0)),
                      _const_spec(wkv.shape),
                      _const_spec(bkv.shape)],
            out_specs=pl.BlockSpec((1, TS, H2), lambda b, t: (b, t, 0)),
        ),
        compiler_params=pltpu.CompilerParams(
            dimension_semantics=("parallel", "parallel"),
            vmem_limit_bytes=min(32 << 20, _vmem_cap_bytes()),
        ),
    )(hidden, wkv, bkv)


# ----------------------------- fused attention + FFN layer kernel -------------

def bert_layer_kernel(x_ref, kv_ref, mask_ref,
                      wq_ref, bq_ref, wo_ref, bo_ref, g1_ref, b1_ref,
                      wi_ref, bi_ref, wo2_ref, bo2_ref, g2_ref, b2_ref,
                      *out_and_scratch, num_heads, return_probs):
    f32 = jnp.float32
    bf16 = jnp.bfloat16

    if return_probs:
        out_ref, probs_ref, ctx_ref = out_and_scratch
    else:
        out_ref, ctx_ref = out_and_scratch
        probs_ref = None

    x = x_ref[0]          # (TQ, H) bf16  -- query-row tile (also residual rows)
    kv = kv_ref[0]        # (S, 2H) bf16  -- precomputed K|V for the whole sequence
    mask = mask_ref[0]    # (1,  S) f32   -- additive key mask

    TQ, H = x.shape
    S = kv.shape[0]
    hd = H // num_heads

    # ---- Q projection (1/sqrt(hd) folded into wq/bq at pack time) ----
    q = jnp.dot(x, wq_ref[...], preferred_element_type=f32) + bq_ref[...]      # (TQ, H)
    q = q.astype(bf16)                                                         # cast once

    k = kv[:, :H]                                                              # (S, H) bf16
    v = kv[:, H:]                                                              # (S, H) bf16
    mask_b = jnp.broadcast_to(mask, (TQ, S))                                   # broadcast once

    # ---- attention: unrolled per-head loop, one (TQ,S) score tile live ----
    qk_dims = (((1,), (1,)), ((), ()))        # contract feature dim; no explicit k.T
    for h in range(num_heads):
        sl = slice(h * hd, (h + 1) * hd)
        s_h = lax.dot_general(q[:, sl], k[:, sl], dimension_numbers=qk_dims,
                              preferred_element_type=f32) + mask_b             # (TQ, S)
        m = jnp.max(s_h, axis=-1, keepdims=True)
        e = jnp.exp(s_h - m)
        denom = jnp.sum(e, axis=-1, keepdims=True)
        p = e * pl.reciprocal(denom, approx=True)                              # EUP slot
        if probs_ref is not None:
            probs_ref[0, h] = p.astype(probs_ref.dtype)
        # per-head context straight into its column slice of the scratch
        ctx_ref[:, sl] = jnp.dot(p.astype(bf16), v[:, sl],
                                 preferred_element_type=f32)                   # (TQ, hd)

    ctx = ctx_ref[...].astype(bf16)                                            # one cast

    # ---- BertSelfOutput: dense + residual + LayerNorm ----
    attn = jnp.dot(ctx, wo_ref[...], preferred_element_type=f32) + bo_ref[...]
    attn = _layer_norm(attn + x.astype(f32), g1_ref[...], b1_ref[...])

    # ---- BertIntermediate: dense + exact GELU ----
    inter = jnp.dot(attn.astype(bf16), wi_ref[...], preferred_element_type=f32) + bi_ref[...]
    inter = _gelu_exact(inter)

    # ---- BertOutputF (features=None): dense + residual + LayerNorm ----
    out = jnp.dot(inter.astype(bf16), wo2_ref[...], preferred_element_type=f32) + bo2_ref[...]
    out = _layer_norm(out + attn, g2_ref[...], b2_ref[...])
    out_ref[0] = out.astype(out_ref.dtype)


# ----------------------------- wrappers -----------------------------

def pack_layer_params(p, num_heads):
    """bf16 weights, fused K/V, 1/sqrt(hd) folded into wq/bq, (1,N) f32 params."""
    bf16, f32 = jnp.bfloat16, jnp.float32
    H = p['wq'].shape[0]
    scale = 1.0 / math.sqrt(H // num_heads)
    return {
        'wq': (p['wq'] * scale).astype(bf16),
        'bq': (p['bq'] * scale).reshape(1, -1).astype(f32),
        'wkv': jnp.concatenate([p['wk'], p['wv']], axis=1).astype(bf16),
        'bkv': jnp.concatenate([p['bk'], p['bv']]).reshape(1, -1).astype(f32),
        'wo': p['wo'].astype(bf16),
        'bo': p['bo'].reshape(1, -1).astype(f32),
        'g1': p['g1'].reshape(1, -1).astype(f32),
        'b1': p['b1'].reshape(1, -1).astype(f32),
        'wi': p['wi'].astype(bf16),
        'bi': p['bi'].reshape(1, -1).astype(f32),
        'wo2': p['wo2'].astype(bf16),
        'bo2': p['bo2'].reshape(1, -1).astype(f32),
        'g2': p['g2'].reshape(1, -1).astype(f32),
        'b2': p['b2'].reshape(1, -1).astype(f32),
    }


def bert_layer_forward(hidden, kv, mask3, packed, num_heads, *,
                       return_probs=True, probs_dtype=jnp.bfloat16, q_tile=None):
    """One BertLayerF forward. hidden (B,S,H) bf16, kv (B,S,2H) bf16,
    mask3 (B,1,S) additive f32."""
    B, S, H = hidden.shape
    I = packed['wi'].shape[1]
    TQ = q_tile or _pick_seq_tile(S)
    assert S % TQ == 0
    n_qt = S // TQ

    order = ['wq', 'bq', 'wo', 'bo', 'g1', 'b1',
             'wi', 'bi', 'wo2', 'bo2', 'g2', 'b2']
    w_args = [packed[n] for n in order]

    in_specs = [
        pl.BlockSpec((1, TQ, H), lambda b, t: (b, t, 0)),       # query-row tile
        pl.BlockSpec((1, S, 2 * H), lambda b, t: (b, 0, 0)),    # precomputed K|V slab
        pl.BlockSpec((1, 1, S), lambda b, t: (b, 0, 0)),        # additive key mask
    ] + [_const_spec(w.shape) for w in w_args]

    out_specs = [pl.BlockSpec((1, TQ, H), lambda b, t: (b, t, 0))]
    out_shape = [jax.ShapeDtypeStruct((B, S, H), hidden.dtype)]
    if return_probs:
        out_specs.append(pl.BlockSpec((1, num_heads, TQ, S), lambda b, t: (b, 0, t, 0)))
        out_shape.append(jax.ShapeDtypeStruct((B, num_heads, S, S), probs_dtype))

    kernel = functools.partial(bert_layer_kernel, num_heads=num_heads,
                               return_probs=return_probs)

    results = pl.pallas_call(
        kernel,
        out_shape=tuple(out_shape),
        grid_spec=pltpu.PrefetchScalarGridSpec(
            num_scalar_prefetch=0,
            grid=(B, n_qt),
            in_specs=in_specs,
            out_specs=tuple(out_specs),
            scratch_shapes=[pltpu.VMEM((TQ, H), jnp.float32)],   # per-head ctx assembly
        ),
        compiler_params=pltpu.CompilerParams(
            dimension_semantics=("parallel", "parallel"),
            vmem_limit_bytes=_vmem_limit_bytes(S, TQ, H, I, num_heads, return_probs),
        ),
    )(hidden, kv, mask3, *w_args)

    if return_probs:
        layer_out, attn_probs = results
    else:
        (layer_out,) = results
        attn_probs = None
    return layer_out, attn_probs


def bert_encoder_forward(hidden, mask, layer_params, num_heads,
                         output_all_encoded_layers=True,
                         return_probs=True, probs_dtype=jnp.bfloat16):
    """BertEncoderF.forward (features=None path). Hidden kept bf16 in HBM."""
    B, S, H = hidden.shape
    h = hidden.astype(jnp.bfloat16)
    mask3 = mask.reshape(B, 1, S).astype(jnp.float32)
    packed = [pack_layer_params(p, num_heads) for p in layer_params]
    all_encoder_layers, all_layer_attns = [], []
    for p in packed:
        kv = kv_projection(h, p['wkv'], p['bkv'])                # once per layer
        h, attn_probs = bert_layer_forward(h, kv, mask3, p, num_heads,
                                           return_probs=return_probs,
                                           probs_dtype=probs_dtype)
        all_layer_attns.append(attn_probs)
        if output_all_encoded_layers:
            all_encoder_layers.append(h)
    if not output_all_encoded_layers:
        all_encoder_layers.append(h)
    return all_encoder_layers, all_layer_attns


# ----------------------------- param init -----------------------------

def make_layer_params(key, hidden_size, intermediate_size):
    ks = jax.random.split(key, 6)
    H, I = hidden_size, intermediate_size
    std = 0.02

    def lin(k, din, dout):
        # stored as (in, out) so kernel does x @ W + b (== torch x @ W.T + b)
        return jax.random.normal(k, (din, dout), jnp.float32) * std

    return {
        'wq': lin(ks[0], H, H), 'bq': jnp.zeros((H,), jnp.float32),
        'wk': lin(ks[1], H, H), 'bk': jnp.zeros((H,), jnp.float32),
        'wv': lin(ks[2], H, H), 'bv': jnp.zeros((H,), jnp.float32),
        'wo': lin(ks[3], H, H), 'bo': jnp.zeros((H,), jnp.float32),
        'g1': jnp.ones((H,), jnp.float32), 'b1': jnp.zeros((H,), jnp.float32),
        'wi': lin(ks[4], H, I), 'bi': jnp.zeros((I,), jnp.float32),
        'wo2': lin(ks[5], I, H), 'bo2': jnp.zeros((H,), jnp.float32),
        'g2': jnp.ones((H,), jnp.float32), 'b2': jnp.zeros((H,), jnp.float32),
    }


# ----------------------------- pure-JAX f32 reference -----------------------------

def _ref_ln(x, g, b, eps=1e-12):
    u = jnp.mean(x, axis=-1, keepdims=True)
    s = jnp.mean((x - u) ** 2, axis=-1, keepdims=True)
    return (x - u) / jnp.sqrt(s + eps) * g + b


def _ref_layer(x, mask, p, num_heads):
    B, S, H = x.shape
    hd = H // num_heads
    q = x @ p['wq'] + p['bq']
    k = x @ p['wk'] + p['bk']
    v = x @ p['wv'] + p['bv']
    qh = q.reshape(B, S, num_heads, hd).transpose(0, 2, 1, 3)
    kh = k.reshape(B, S, num_heads, hd).transpose(0, 2, 1, 3)
    vh = v.reshape(B, S, num_heads, hd).transpose(0, 2, 1, 3)
    scores = jnp.einsum('bhqd,bhkd->bhqk', qh, kh) / math.sqrt(hd)
    scores = scores + mask[:, None, None, :]
    probs = jax.nn.softmax(scores, axis=-1)
    ctx = jnp.einsum('bhqk,bhkd->bhqd', probs, vh)
    ctx = ctx.transpose(0, 2, 1, 3).reshape(B, S, H)
    attn = _ref_ln(ctx @ p['wo'] + p['bo'] + x, p['g1'], p['b1'])
    inter = jax.nn.gelu(attn @ p['wi'] + p['bi'], approximate=False)
    out = _ref_ln(inter @ p['wo2'] + p['bo2'] + attn, p['g2'], p['b2'])
    return out, probs


# ----------------------------- main -----------------------------

if __name__ == "__main__":
    B, S, H = 2, 8, 32
    NUM_HEADS = 4
    INTERMEDIATE = 64
    NUM_LAYERS = 2

    key = jax.random.PRNGKey(0)
    k_hidden, k_params = jax.random.split(key)

    hidden_states = jax.random.normal(k_hidden, (B, S, H), jnp.float32)

    # additive attention mask: batch 0 attends all 8 tokens, batch 1 only first 5
    lengths = jnp.array([8, 5], dtype=jnp.int32)
    positions = jnp.arange(S)[None, :]
    attention_mask = jnp.where(positions < lengths[:, None], 0.0, -10000.0).astype(jnp.float32)

    layer_keys = jax.random.split(k_params, NUM_LAYERS)
    layer_params = [make_layer_params(k, H, INTERMEDIATE) for k in layer_keys]

    all_layers, all_attns = bert_encoder_forward(
        hidden_states, attention_mask, layer_params, NUM_HEADS,
        output_all_encoded_layers=True)

    jax.block_until_ready(all_layers)
    jax.block_until_ready(all_attns)

    assert len(all_layers) == NUM_LAYERS and len(all_attns) == NUM_LAYERS
    assert all_layers[-1].shape == (B, S, H)
    assert all_attns[-1].shape == (B, NUM_HEADS, S, S)

    # numerical sanity check against a pure-JAX f32 reference (bf16 tolerance)
    ref_h = hidden_states
    for p in layer_params:
        ref_h, ref_probs = _ref_layer(ref_h, attention_mask, p, NUM_HEADS)
    out_f32 = np.array(all_layers[-1].astype(jnp.float32))
    probs_f32 = np.array(all_attns[-1].astype(jnp.float32))
    np.testing.assert_allclose(out_f32, np.array(ref_h), rtol=0.1, atol=0.1)
    np.testing.assert_allclose(probs_f32, np.array(ref_probs), rtol=0.1, atol=0.05)

    print("KERNEL_OK")
</pallas_src>

<mosaic_0001>
module attributes {stable_mosaic.version = 11 : i64} {
  func.func @k(%arg0: i32, %arg1: memref<8x128xf32, #tpu.memory_space<vmem>>, %arg2: memref<8x128xf32, #tpu.memory_space<vmem>>) attributes {dimension_semantics = [#tpu.dimension_semantics<arbitrary>], iteration_bounds = array<i64: 2>, scalar_prefetch = 0 : i64, scratch_operands = 0 : i64, tpu.core_type = #tpu.core_type<tc>, window_params = [{pipeline_mode = #tpu.pipeline_mode<synchronous>, transform_indices = @transform_0, window_bounds = array<i64: 8, 128>}, {pipeline_mode = #tpu.pipeline_mode<synchronous>, transform_indices = @transform_1, window_bounds = array<i64: 8, 128>}]} {
    %c0 = arith.constant 0 : index
    %c0_0 = arith.constant 0 : index
    %0 = vector.load %arg1[%c0, %c0_0] : memref<8x128xf32, #tpu.memory_space<vmem>>, vector<8x128xf32>
    %cst = arith.constant 2.000000e+00 : f32
    %1 = vector.broadcast %cst : f32 to vector<8x128xf32>
    %2 = arith.mulf %0, %1 : vector<8x128xf32>
    %c0_1 = arith.constant 0 : index
    %c0_2 = arith.constant 0 : index
    %3 = vector.load %arg2[%c0_1, %c0_2] : memref<8x128xf32, #tpu.memory_space<vmem>>, vector<8x128xf32>
    tpu.vector_store %arg2[%c0_1, %c0_2], %2 {strides = array<i32>} : memref<8x128xf32, #tpu.memory_space<vmem>>, vector<8x128xf32>,
    return
  }
  func.func @transform_0(%arg0: i32) -> (i32, i32) {
    %c0_i32 = arith.constant 0 : i32
    %c0_i32_0 = arith.constant 0 : i32
    %c0_i32_1 = arith.constant 0 : i32
    return %c0_i32, %c0_i32_0 : i32, i32
  }
  func.func @transform_1(%arg0: i32) -> (i32, i32) {
    %c0_i32 = arith.constant 0 : i32
    %c0_i32_0 = arith.constant 0 : i32
    %c0_i32_1 = arith.constant 0 : i32
    return %c0_i32, %c0_i32_0 : i32, i32
  }
}

module attributes {stable_mosaic.version = 11 : i64} {
  func.func @kv_proj_kernel(%arg0: i32, %arg1: i32, %arg2: memref<1x8x32xbf16, #tpu.memory_space<vmem>>, %arg3: memref<32x64xbf16, #tpu.memory_space<vmem>>, %arg4: memref<1x64xf32, #tpu.memory_space<vmem>>, %arg5: memref<1x8x64xbf16, #tpu.memory_space<vmem>>) attributes {dimension_semantics = [#tpu.dimension_semantics<parallel>, #tpu.dimension_semantics<parallel>], iteration_bounds = array<i64: 2, 1>, scalar_prefetch = 0 : i64, scratch_operands = 0 : i64, tpu.core_type = #tpu.core_type<tc>, window_params = [{transform_indices = @transform_0, window_bounds = array<i64: 1, 8, 32>}, {pipeline_mode = #tpu.pipeline_mode<synchronous>, transform_indices = @transform_1, window_bounds = array<i64: 32, 64>}, {pipeline_mode = #tpu.pipeline_mode<synchronous>, transform_indices = @transform_2, window_bounds = array<i64: 1, 64>}, {transform_indices = @transform_3, window_bounds = array<i64: 1, 8, 64>}]} {
    %c0 = arith.constant 0 : index
    %c0_0 = arith.constant 0 : index
    %c0_1 = arith.constant 0 : index
    %0 = vector.load %arg2[%c0, %c0_0, %c0_1] : memref<1x8x32xbf16, #tpu.memory_space<vmem>>, vector<1x8x32xbf16>
    %1 = vector.shape_cast %0 : vector<1x8x32xbf16> to vector<8x32xbf16>
    %c0_2 = arith.constant 0 : index
    %c0_3 = arith.constant 0 : index
    %2 = vector.load %arg3[%c0_2, %c0_3] : memref<32x64xbf16, #tpu.memory_space<vmem>>, vector<32x64xbf16>
    %cst = arith.constant dense<0.000000e+00> : vector<8x64xf32>
    %3 = tpu.matmul %1, %2, %cst {dimension_numbers = #tpu.dot_dimension_numbers<[1], [0], [0], [1], [0, 0, 1, 1], [], []>} : vector<8x32xbf16>, vector<32x64xbf16>, vector<8x64xf32> -> vector<8x64xf32>
    %c0_4 = arith.constant 0 : index
    %c0_5 = arith.constant 0 : index
    %4 = vector.load %arg4[%c0_4, %c0_5] : memref<1x64xf32, #tpu.memory_space<vmem>>, vector<1x64xf32>
    %5 = vector.broadcast %4 : vector<1x64xf32> to vector<8x64xf32>
    %6 = arith.addf %3, %5 : vector<8x64xf32>
    %7 = arith.truncf %6 : vector<8x64xf32> to vector<8x64xbf16>
    %c0_6 = arith.constant 0 : index
    %c0_7 = arith.constant 0 : index
    %c0_8 = arith.constant 0 : index
    %8 = vector.load %arg5[%c0_6, %c0_7, %c0_8] : memref<1x8x64xbf16, #tpu.memory_space<vmem>>, vector<1x8x64xbf16>
    %9 = vector.shape_cast %8 : vector<1x8x64xbf16> to vector<8x64xbf16>
    %10 = vector.shape_cast %7 : vector<8x64xbf16> to vector<1x8x64xbf16>
    tpu.vector_store %arg5[%c0_6, %c0_7, %c0_8], %10 {strides = array<i32>} : memref<1x8x64xbf16, #tpu.memory_space<vmem>>, vector<1x8x64xbf16>,
    return
  }
  func.func @transform_0(%arg0: i32, %arg1: i32) -> (i32, i32, i32) {
    %c0_i32 = arith.constant 0 : i32
    %c0_i32_0 = arith.constant 0 : i32
    return %arg0, %arg1, %c0_i32 : i32, i32, i32
  }
  func.func @transform_1(%arg0: i32, %arg1: i32) -> (i32, i32) {
    %c0_i32 = arith.constant 0 : i32
    %c0_i32_0 = arith.constant 0 : i32
    %c0_i32_1 = arith.constant 0 : i32
    return %c0_i32, %c0_i32_0 : i32, i32
  }
  func.func @transform_2(%arg0: i32, %arg1: i32) -> (i32, i32) {
    %c0_i32 = arith.constant 0 : i32
    %c0_i32_0 = arith.constant 0 : i32
    %c0_i32_1 = arith.constant 0 : i32
    return %c0_i32, %c0_i32_0 : i32, i32
  }
  func.func @transform_3(%arg0: i32, %arg1: i32) -> (i32, i32, i32) {
    %c0_i32 = arith.constant 0 : i32
    %c0_i32_0 = arith.constant 0 : i32
    return %arg0, %arg1, %c0_i32 : i32, i32, i32
  }
}

</mosaic_0001>

<bundles_post_ra>
// kernel: tpu_custom_call.1
= control target key start
LH: loop header
LB: loop body
LE: loop exit
PB: predicated region body
PF: predicated region fallthrough
CT: control target
= control target key end

     0   :  { %6 = vsyncpa [#allocation3], 0  ;;  %s287_s0 = inlined_call_operand.hbm [shape: f32[8,128], index: 0, kind: input, shape index: {}]   ;;  %s288_s1 = inlined_call_operand.hbm [shape: f32[8,128], index: 1, kind: output, shape index: {}]  }
   0x1   :  { %7 = vsyncpa [#allocation4], 0  ;;  %s270_s6 = smov 0  }
   0x2 LB: > { %s149_s7 = sadd.s32 4294967295, %s256_s6   ;;  %p150_p0 = scmp.ge.s32.totalorder %s256_s6, 1  ;;  %s256_s6 = sphi %s270_s6, %s13_s6  }
   0x3   : > { %p60_p1 = scmp.lt.s32.totalorder %s256_s6, 3  ;;  %s72_s10 = sshll.u32 %s287_s0, 4  ;;  %s73_s10 = int_to_ptr.hbm [resolvable:$true] %s72_s10 }
   0x4   : > { %p170_p3 = scmp.eq.s32.totalorder %s149_s7, 0  ;;  %s258_s11 = smov [#allocation2]  }
   0x5   : > { %p61_p2 = pnand %p150_p0, %p60_p1  ;;  %s74_s12 = sshll.u32 %s258_s11, 4  ;;  %s75_s12 = int_to_ptr.vmem [resolvable:$true] %s74_s12 }
   0x7   : > { %p166_p4 = pneg %p61_p2  ;;  %87 = sbr.rel (%p61_p2) target bundleno = 20 (0x14), region = 24 }
   0x9   : > { %p167_p5 = pnand %p170_p3, %p166_p4 }
   0xb   : > { %169 = dma.hbm_to_vmem [thread:$0]  (!%p167_p5), %s73_s10, 128, %s75_s12, [#allocation3]  }
   0xc   : > { %247 = dma.done.wait (%p170_p3), [#allocation3], 128  }
   0xd   : > { %249 = vsyncadd (%p170_p3), [#allocation3], 4294967168  ;;  %s259_s13 = smov [#allocation5]   ;;  %s109_s17 = sshll.u32 %s288_s1, 4  ;;  %v98_v0 = vld [vmem:[#allocation2] sm:$0xff]  ;;  %s110_s17 = int_to_ptr.hbm [resolvable:$true] %s109_s17 }
   0xe   : > { %s107_s14 = sshll.u32 %s259_s13, 4  ;;  %p172_p6 = scmp.eq.s32.totalorder %s149_s7, 1  ;;  %v99_v1 = vmul.f32 2.0, %v98_v0  ;;  %s108_s14 = int_to_ptr.vmem [resolvable:$true] %s107_s14 }
  0x10   : > { %100 = vst [vmem:[#allocation5] sm:$0xff] %v99_v1 }
  0x11   : > { %163 = dma.vmem_to_hbm [thread:$0]  (%p172_p6), %s108_s14, 128, %s110_s17, [#allocation4]  }
  0x12   : > { %251 = dma.done.wait (%p172_p6), [#allocation4], 128  }
  0x13   : > { %253 = vsyncadd (%p172_p6), [#allocation4], 4294967168 }
  0x14 PF: > { %s13_s6 = sadd.s32 1, %s256_s6  }
  0x15   : > { %p10_p7 = scmp.ge.s32.totalorder %s13_s6, 4  }
  0x17   :  { %12 = sbr.rel (!%p10_p7) target bundleno = 2 (0x2), region = 53 }
  0x1c   :  { %123 = vsyncpa [#allocation3], 1 }
  0x1d   :  { %125 = vsyncpa [#allocation3 + $0x1], 1 }
  0x1e   :  { %126 = vsyncpa [#allocation4], 1 }
  0x1f   :  { %128 = vsyncpa [#allocation4 + $0x1], 1 }

// kernel: tpu_custom_call.1
= control target key start
LH: loop header
LB: loop body
LE: loop exit
PB: predicated region body
PF: predicated region fallthrough
CT: control target
= control target key end

     0   :  { %8 = vsyncpa [#allocation3], 0  ;;  %s790_s0 = inlined_call_operand.hbm [shape: bf16[2,8,32], index: 0, kind: input, shape index: {}]   ;;  %s791_s1 = inlined_call_operand.hbm [shape: bf16[32,64], index: 1, kind: input, shape index: {}]   ;;  %s792_s2 = inlined_call_operand.vmem [shape: f32[1,64], index: 2, kind: input, shape index: {}]   ;;  %s793_s3 = inlined_call_operand.hbm [shape: bf16[2,8,64], index: 3, kind: output, shape index: {}]  }
   0x1   :  { %10 = vsyncpa [#allocation3 + $0x1], 0 }
   0x2   :  { %11 = vsyncpa [#allocation6], 0 }
   0x3   :  { %12 = vsyncpa [#allocation4], 0 }
   0x4   :  { %14 = vsyncpa [#allocation4 + $0x1], 0  ;;  %s644_s12 = smov 0   ;;  %s646_s13 = smov 0  }
   0x5   :  { %s648_s14 = smov 0   ;;  %s650_s15 = smov 0  }
   0x6   :  { %s652_s16 = smov 0   ;;  %s654_s17 = smov 0  }
   0x7 LB: > { %s371_s18 = sadd.s32 4294967295, %s619_s17   ;;  %p373_p0 = scmp.ge.s32.totalorder %s619_s17, 1  ;;  %s619_s17 = sphi %s654_s17, %s20_s17   ;;  %s615_s16 = sphi %s652_s16, %s804_s16   ;;  %s611_s15 = sphi %s650_s15, %s803_s15   ;;  %s607_s14 = sphi %s648_s14, %s802_s14   ;;  %s603_s13 = sphi %s646_s13, %s801_s13   ;;  %s599_s12 = sphi %s644_s12, %s800_s12  }
   0x8   : > { %p676_p1 = scmp.eq.s32.totalorder %s371_s18, 0  ;;  %p135_p2 = scmp.lt.s32.totalorder %s619_s17, 3 }
   0x9   : > { %s146_s22 = sshll.u32 %s791_s1, 4  ;;  %s621_s24 = smov [#allocation5]   ;;  %s147_s22 = int_to_ptr.hbm [resolvable:$true] %s146_s22 }
   0xa   : > { %p684_p3 = pnand %p373_p0, %p135_p2  ;;  %s148_s25 = sshll.u32 %s621_s24, 4  ;;  %s149_s25 = int_to_ptr.vmem [resolvable:$true] %s148_s25 }
   0xb   : > { %p375_p6 = scmp.ge.s32.totalorder %s619_s17, 2  ;;  %s622_s26 = smov 64  }
   0xc   : > { %p405_p4 = pneg %p684_p3  ;;  %s623_s27 = smov 4  }
   0xd   : > { %s372_s28 = sadd.s32 4294967294, %s619_s17   ;;  %s32_s29 = sadd.s32 1, %s615_s16 }
   0xe   : > { %p406_p5 = pnand %p405_p4, %p676_p1  ;;  %s41_s30 = sadd.s32 1, %s607_s14 }
   0xf   : > { %p34_p7 = scmp.ge.s32.totalorder %s32_s29, 2  ;;  %p48_p8 = scmp.ne.s32.totalorder %s607_s14, %s603_s13 }
  0x10   : > { %408 = dma.hbm_to_vmem [thread:$0]  (!%p406_p5), %s147_s22, 256, %s149_s25, [#allocation6], %s622_s26, %s622_s26, %s623_s27  }
  0x11   : > { %p49_p9 = scmp.eq.s32.totalorder %s619_s17, 0  ;;  %p54_p10 = scmp.ne.s32.totalorder %s603_s13, %s599_s12 }
  0x12   : > { %s806_s29 = smov (%p34_p7, %s32_s29), 0  ;;  %p122_p13 = scmp.eq.s32.totalorder %s371_s18, 1 }
  0x13   : > { %p703_p11 = por %p49_p9, %p48_p8  ;;  %p709_p12 = por %p676_p1, %p54_p10 }
  0x14   : > { %s36_s6 = ssub.s32 %s615_s16, %s806_s29  ;;  %p128_p2 = scmp.eq.s32.totalorder %s372_s28, 1 }
  0x15   : > { %p39_p0 = scmp.eq.s32.totalorder %s36_s6, 0  ;;  %p715_p4 = por %p122_p13, %p48_p8 }
  0x16   : > { %p418_p5 = scmp.lt.s32.totalorder %s619_s17, 2  ;;  %p723_p7 = por %p128_p2, %p54_p10 }
  0x17   : > { %s721_s8 = scalar_select %p39_p0, %s607_s14, %s41_s30  }
  0x18   : > { %s165_s10 = sand.u32 1, %s607_s14   ;;  %s377_s20 = sshll.u32 %s615_s16, 2 }
  0x19   : > { %s376_s11 = sshll.u32 %s165_s10, 2  ;;  %s174_s18 = scalar_lea.hbm %s790_s0, %s377_s20 }
  0x1a   : > { %s169_s24 = scalar_lea.vmem [#allocation2], %s376_s11  ;;  %s176_s26 = sshll.u32 %s174_s18, 4  ;;  %s177_s26 = int_to_ptr.hbm [resolvable:$true] %s176_s26 }
  0x1b   : > { %s178_s25 = sshll.u32 %s169_s24, 4  ;;  %p410_p8 = pnand %p418_p5, %p703_p11  ;;  %s179_s25 = int_to_ptr.vmem [resolvable:$true] %s178_s25 }
  0x1c   : > { %s166_s27 = scalar_lea.sflag [#allocation3], %s165_s10  ;;  %187 = sbr.rel (%p684_p3) target bundleno = 178 (0xb2), region = 32 }
  0x1d   : > { %412 = dma.hbm_to_vmem [thread:$0]  (!%p410_p8), %s177_s26, 64, %s179_s25, %s166_s27  }
  0x1e   : > { %s737_s28 = sand.u32 (!%p684_p3), 1, %s603_s13  }
  0x1f   : > { %s379_s30 = sshll.u32 (!%p684_p3), %s737_s28, 2  ;;  %s190_s6 = scalar_lea.sflag (!%p684_p3), [#allocation3], %s737_s28 }
  0x20   : > { %s193_s11 = scalar_lea.vmem (!%p684_p3), [#allocation2], %s379_s30 }
  0x21   : > { %586 = dma.done.wait (%p709_p12), %s190_s6, 64  }
  0x22   : > { %588 = vsyncadd (%p709_p12), %s190_s6, 4294967232 }
  0x23   : > { %590 = dma.done.wait (%p676_p1), [#allocation6], 256  }
  0x24   : > { %592 = vsyncadd (%p676_p1), [#allocation6], 4294967040  ;;  %v396_v0 = vld [vmem:[#allocation5 + $0x8] sm:$0xff]  ;;  %v395_v1 = vld [vmem:[#allocation5] sm:$0xff]  ;;  %vm244_vm0 = vcmask 261120   ;;  %s392_s23 = sshll.u32 %s611_s15, 2 }
  0x25   : > { %254 = vmatpush.bf16.msra.mxu0 %v396_v0  ;;  %v223_v2 = vld [vmem:[%s193_s11] sm:$0xf]  ;;  %s276_s21 = scalar_lea.hbm %s793_s3, %s392_s23  ;;  %s221_s19 = scalar_lea.vmem [#allocation7], %s379_s30  ;;  %vm262_vm1 = vcmask 519168  }
  0x26   : > { %v472_v3 = vld [vmem:[%s792_s2] ss:$0 sm:$0xff]  ;;  %s278_s22 = sshll.u32 %s221_s19, 4  ;;  %s280_s18 = sshll.u32 %s276_s21, 4  ;;  %s279_s22 = int_to_ptr.vmem [resolvable:$true] %s278_s22  ;;  %s281_s18 = int_to_ptr.hbm [resolvable:$true] %s280_s18 }
  0x27   : > { %s265_s15 = scalar_lea.sflag [#allocation4], %s737_s28  ;;  %s547_s24 = sshra.s32 %s281_s18, 4  ;;  %s548_s24 = int_to_ptr.hbm [resolvable:$true] %s547_s24 }
  0x28   : > { %s549_s25 = scalar_lea.hbm %s548_s24, 4  ;;  %s553_s30 = scalar_lea.hbm %s793_s3, 8 }
  0x29   : > { %255 = vmatpush.bf16.msra.mxu0 %v395_v1  ;;  %p550_p1 = scmp.ne.s32.totalorder %s548_s24, %s549_s25  ;;  %p554_p10 = scmp.lt.s32.totalorder %s548_s24, %s793_s3 }
  0x2a   : > { %p555_p11 = scmp.lt.s32.totalorder %s553_s30, %s549_s25 }
  0x2b   : > { %p551_p3 = pnand %p550_p1, %p715_p4 }
  0x2c   : > { %390 = vmatmul.msk.bf16.vlgmr.msra.gmra.mxu0 %vm244_vm0, %v223_v2  ;;  %p556_p12 = por %p555_p11, %p554_p10 }
  0x2d   : > { %p552_p9 = pneg %p551_p3 }
  0x2f   : > { %p557_p13 = pnand %p556_p12, %p552_p9 }
  0xa9   : > { %v257_v4 = vpop.f32.mrf.mxu0 }
  0xaa   : > { %v258_v5 = vadd.f32 %v472_v3, %v257_v4 }
  0xac   : > { %v261_v6 = vpack.c.bf16 %v258_v5, %v258_v5 }
  0xae   : > { %263 = vst.msk [vmem:[%s221_s19] sm:$0xf] %vm262_vm1, %v261_v6 }
  0xaf   : > { %560 = shalt.err (!%p557_p13)
}
  0xb0   : > { %403 = dma.vmem_to_hbm [thread:$0]  (%p715_p4), %s279_s22, 64, %s281_s18, %s265_s15  }
  0xb1   : > { %v259_v7 = vpop.f32.mrf.mxu0 }
  0xb2 PF: > { %s292_s28 = sand.u32 1, %s599_s12   ;;  %p414_p0 = pnand %p375_p6, %p723_p7 }
  0xb3   : > { %s293_s23 = scalar_lea.sflag [#allocation4], %s292_s28 }
  0xb4   : > { %p415_p2 = pneg %p414_p0 }
  0xb6   : > { %594 = dma.done.wait (%p415_p2), %s293_s23, 64  }
  0xb7   : > { %596 = vsyncadd (%p415_p2), %s293_s23, 4294967232  ;;  %s20_s17 = sadd.s32 1, %s619_s17   ;;  %s800_s12 = smov %s603_s13 }
  0xb8   : > { %p17_p5 = scmp.ge.s32.totalorder %s20_s17, 4   ;;  %s801_s13 = smov %s607_s14 }
  0xb9   : > { %s802_s14 = smov %s721_s8  ;;  %s803_s15 = smov %s615_s16 }
  0xba   : > { %s804_s16 = smov %s806_s29  ;;  %19 = sbr.rel (!%p17_p5) target bundleno = 7 (0x7), region = 81 }
  0xbf   :  { %299 = vsyncpa [#allocation3], 1 }
  0xc0   :  { %301 = vsyncpa [#allocation3 + $0x1], 1 }
  0xc1   :  { %302 = vsyncpa [#allocation6], 1 }
  0xc2   :  { %303 = vsyncpa [#allocation4], 1 }
  0xc3   :  { %305 = vsyncpa [#allocation4 + $0x1], 1 }

</bundles_post_ra>
